<compile_context>
chip_gen: v6e
topology: v6e:2x2x1
jax: 0.10.0
libtpu: 0.0.40
codegen_flags: <defaults>
</compile_context>

<pallas_src>
import jax
import jax.numpy as jnp
from jax.experimental import pallas as pl
from jax.experimental.pallas import tpu as pltpu


# --------------------------------------------------------------------------------------
# Kernels
# --------------------------------------------------------------------------------------

def gru_cell_kernel(idx_ref,        # scalar prefetch: (B,) int32 item ids (SMEM)
                    wih_hbm,        # (V, 3H_pad) f32 in HBM, b_ih folded into rows
                    h0_ref,         # (B, H_pad)  f32           (resident)
                    whh_t_ref,      # (H_pad, 3H_pad) compute dtype
                    bhh_ref,        # (1, 3H_pad) f32
                    hnew_ref,       # (B, H_pad)  f32 out
                    hcd_ref,        # (B, H_pad)  compute-dtype out (fed to h2o kernel)
                    gi_buf,         # VMEM (B, 3H_pad) f32 scratch: gathered W_ih^T rows
                    sem):           # DMA semaphores (B,)
    B = gi_buf.shape[0]
    V = wih_hbm.shape[0]

    # Start the DMA row-gather of the B selected rows of W_ih^T (+ b_ih).  This replaces
    # the dense one-hot matmul.  Out-of-range ids are clamped to [0, V-1] (the PyTorch
    # scatter_ path would raise instead) -- documented behaviour difference.
    copies = []
    for b in range(B):                       # B is small & static -> unrolled
        row = jnp.clip(idx_ref[b], 0, V - 1)
        cp = pltpu.make_async_copy(wih_hbm.at[pl.ds(row, 1)],
                                   gi_buf.at[pl.ds(b, 1)],
                                   sem.at[b])
        cp.start()
        copies.append(cp)

    h = h0_ref[...]                          # (B, H_pad) f32
    H = h.shape[-1]                          # padded hidden size (gate-aligned)
    cd = whh_t_ref.dtype

    # Recurrent matmul runs while the row-gather DMAs are in flight.
    gh = jnp.dot(h.astype(cd), whh_t_ref[...],
                 preferred_element_type=jnp.float32) + bhh_ref[...]

    for cp in copies:                        # gi is only needed from here on
        cp.wait()
    gi = gi_buf[...]                         # (B, 3H_pad), already includes b_ih

    # torch.nn.GRU gate order [r, z, n]; b_hn stays inside r * (.) so it is NOT folded
    # with b_ih.  Gate slices are lane-aligned because H is padded to a multiple of 128.
    r = jax.nn.sigmoid(gi[:, 0:H] + gh[:, 0:H])
    z = jax.nn.sigmoid(gi[:, H:2 * H] + gh[:, H:2 * H])
    n = jnp.tanh(gi[:, 2 * H:3 * H] + r * gh[:, 2 * H:3 * H])
    h_new = (1.0 - z) * n + z * h            # f32 element-wise path (h carried in f32)

    hnew_ref[...] = h_new
    hcd_ref[...] = h_new.astype(hcd_ref.dtype)


def h2o_kernel(h_ref,        # (B, H_pad) compute dtype (resident)
               who_t_ref,    # (H_pad, TO) compute dtype (streamed tile)
               bho_ref,      # (1, TO) f32 (streamed tile)
               logit_ref):   # (B, TO) out (lane-dense store)
    logit_ref[...] = jnp.tanh(
        jnp.dot(h_ref[...], who_t_ref[...], preferred_element_type=jnp.float32)
        + bho_ref[...]).astype(logit_ref.dtype)


# --------------------------------------------------------------------------------------
# Wrapper
# --------------------------------------------------------------------------------------

def _round_up(x, m):
    return ((x + m - 1) // m) * m


def _pad_last(a, new_size):
    pad = new_size - a.shape[-1]
    if pad == 0:
        return a
    cfg = [(0, 0)] * (a.ndim - 1) + [(0, pad)]
    return jnp.pad(a, cfg)


def _pad_gate_cols(a, H, H_pad):
    """a[..., 3H] gate-blocked [r|z|n] -> [..., 3*H_pad], each gate zero-padded."""
    if H_pad == H:
        return a
    parts = [_pad_last(a[..., g * H:(g + 1) * H], H_pad) for g in range(3)]
    return jnp.concatenate(parts, axis=-1)


def _vmem_limit_bytes(est_bytes):
    """Generation-aware VMEM cap: <= 0.75 * physical (v7x only has 64 MiB/TC)."""
    cap = 64 << 20
    try:
        cap = pltpu.get_tpu_info().vmem_capacity_bytes
    except Exception:
        pass
    return int(max(16 << 20, min(est_bytes, int(0.75 * cap))))


def prepare_gru4rec_params(params, *, compute_dtype=jnp.bfloat16, block_o=4096):
    """Hoisted, cacheable weight prep (call once, reuse across forward calls)."""
    threeH, V = params["w_ih"].shape
    H = threeH // 3
    O = params["w_h2o"].shape[0]

    H_pad = _round_up(H, 128)
    block_o = min(block_o, _round_up(O, 128))
    assert block_o % 128 == 0, "output tile must be lane-dense (multiple of 128)"
    num_tiles = int(pl.cdiv(O, block_o))
    O_pad = num_tiles * block_o

    # Fold b_ih into each row of W_ih^T: for one-hot x, gi = W_ih^T[idx] + b_ih.
    wih_t = (params["w_ih"].T.astype(jnp.float32)
             + params["b_ih"][None, :].astype(jnp.float32))          # (V, 3H) f32
    wih_t = _pad_gate_cols(wih_t, H, H_pad)                          # (V, 3H_pad), HBM-only

    whh_t = _pad_gate_cols(params["w_hh"].T.astype(jnp.float32), H, H_pad)
    whh_t = jnp.pad(whh_t, ((0, H_pad - H), (0, 0))).astype(compute_dtype)   # (H_pad, 3H_pad)

    bhh = _pad_gate_cols(params["b_hh"].reshape(1, -1).astype(jnp.float32), H, H_pad)

    who_t = jnp.pad(params["w_h2o"].T.astype(jnp.float32),
                    ((0, H_pad - H), (0, O_pad - O))).astype(compute_dtype)  # (H_pad, O_pad)
    bho = _pad_last(params["b_h2o"].reshape(1, -1).astype(jnp.float32), O_pad)

    # TODO(synk): 8-bit streaming of who_t (int8 on v5e/v6e, fp8 e4m3 on v7x) with
    # per-column scales would ~halve the dominant HBM traffic; needs accuracy validation.
    # TODO(synk): multi-layer GRU + inter-layer dropout not implemented (num_layers=1
    # default; dropout only applies between layers, so it is a no-op here).

    return dict(wih_t=wih_t, whh_t=whh_t, bhh=bhh, who_t=who_t, bho=bho,
                V=V, H=H, H_pad=H_pad, O=O, O_pad=O_pad,
                block_o=block_o, num_tiles=num_tiles, compute_dtype=compute_dtype)


def gru4rec_forward(item_idx, hidden, prep, *, out_dtype=jnp.float32):
    """item_idx: (B,) int32; hidden: (num_layers=1, B, H) f32; prep: prepare_gru4rec_params()."""
    B = item_idx.shape[0]
    H, H_pad = prep["H"], prep["H_pad"]
    O, O_pad = prep["O"], prep["O_pad"]
    block_o, num_tiles = prep["block_o"], prep["num_tiles"]
    cd = prep["compute_dtype"]
    cd_b = jnp.dtype(cd).itemsize
    out_b = jnp.dtype(out_dtype).itemsize
    threeHp = 3 * H_pad

    # TODO(synk): for session inference, fuse T time steps / multiple sessions into one
    # pass (compute the T hidden states first, then one tiled h2o over a (T*B, H) LHS)
    # to raise arithmetic intensity and move off the HBM roofline.

    h0 = hidden[0].astype(jnp.float32)
    if H_pad != H:
        h0 = jnp.pad(h0, ((0, 0), (0, H_pad - H)))
    item_idx = item_idx.astype(jnp.int32)

    # --- VMEM budgets with headroom ---------------------------------------------------
    vmem1 = _vmem_limit_bytes(
        2 * (B * H_pad * 4 + H_pad * threeHp * cd_b + threeHp * 4
             + B * H_pad * 4 + B * H_pad * cd_b)
        + B * threeHp * 4 + (4 << 20))
    vmem2 = _vmem_limit_bytes(
        3 * (H_pad * block_o * cd_b + block_o * 4)
        + 2 * (B * H_pad * cd_b + B * block_o * out_b) + (4 << 20))

    # --- kernel 1: GRU cell (row gather + recurrent matmul + gates) ---------------------
    h_new_pad, h_cd = pl.pallas_call(
        gru_cell_kernel,
        out_shape=(jax.ShapeDtypeStruct((B, H_pad), jnp.float32),
                   jax.ShapeDtypeStruct((B, H_pad), cd)),
        grid_spec=pltpu.PrefetchScalarGridSpec(
            num_scalar_prefetch=1,
            grid=(1,),
            in_specs=[
                pl.BlockSpec(memory_space=pl.ANY),                        # W_ih^T stays in HBM
                pl.BlockSpec((B, H_pad), lambda i, idx: (0, 0)),          # h0
                pl.BlockSpec((H_pad, threeHp), lambda i, idx: (0, 0)),    # W_hh^T
                pl.BlockSpec((1, threeHp), lambda i, idx: (0, 0)),        # b_hh
            ],
            out_specs=(
                pl.BlockSpec((B, H_pad), lambda i, idx: (0, 0)),          # h_new (f32)
                pl.BlockSpec((B, H_pad), lambda i, idx: (0, 0)),          # h_new (compute dtype)
            ),
            scratch_shapes=[
                pltpu.VMEM((B, threeHp), jnp.float32),                    # gathered gi rows
                pltpu.SemaphoreType.DMA((B,)),
            ],
        ),
        compiler_params=pltpu.CompilerParams(
            dimension_semantics=("arbitrary",),
            vmem_limit_bytes=vmem1,
        ),
    )(item_idx, prep["wih_t"], h0, prep["whh_t"], prep["bhh"])

    # --- kernel 2: tiled h2o projection + tanh (parallel over output tiles) ------------
    try:
        who_spec = pl.BlockSpec((H_pad, block_o), lambda i: (0, i),
                                pipeline_mode=pl.Buffered(3))
        bho_spec = pl.BlockSpec((1, block_o), lambda i: (0, i),
                                pipeline_mode=pl.Buffered(3))
    except TypeError:   # older jax without pipeline_mode kwarg
        who_spec = pl.BlockSpec((H_pad, block_o), lambda i: (0, i))
        bho_spec = pl.BlockSpec((1, block_o), lambda i: (0, i))

    logit_pad = pl.pallas_call(
        h2o_kernel,
        out_shape=jax.ShapeDtypeStruct((B, O_pad), out_dtype),
        grid=(num_tiles,),
        in_specs=[
            pl.BlockSpec((B, H_pad), lambda i: (0, 0)),                   # h (resident)
            who_spec,                                                     # W_h2o^T tile (streamed)
            bho_spec,                                                     # b_h2o tile
        ],
        out_specs=pl.BlockSpec((B, block_o), lambda i: (0, i)),           # lane-dense store
        compiler_params=pltpu.CompilerParams(
            dimension_semantics=("parallel",),                            # shard tiles across TCs
            vmem_limit_bytes=vmem2,
        ),
    )(h_cd, prep["who_t"], prep["bho"])

    # Padded logit columns are tanh(0)=0 and sliced off here.
    return logit_pad[:, :O], h_new_pad[:, :H][None]      # hidden back to (num_layers, B, H)


# --------------------------------------------------------------------------------------
# Pure-JAX reference (matches torch.nn.GRU + Linear + Tanh semantics)
# --------------------------------------------------------------------------------------

def ref_forward(item_idx, hidden, params):
    V = params["w_ih"].shape[1]
    H = hidden.shape[-1]
    x = jax.nn.one_hot(item_idx, V, dtype=jnp.float32)
    h = hidden[0]
    gi = x @ params["w_ih"].T + params["b_ih"]
    gh = h @ params["w_hh"].T + params["b_hh"]
    r = jax.nn.sigmoid(gi[:, :H] + gh[:, :H])
    z = jax.nn.sigmoid(gi[:, H:2 * H] + gh[:, H:2 * H])
    n = jnp.tanh(gi[:, 2 * H:] + r * gh[:, 2 * H:])
    h_new = (1.0 - z) * n + z * h
    logit = jnp.tanh(h_new @ params["w_h2o"].T + params["b_h2o"])
    return logit, h_new[None]


if __name__ == "__main__":
    # Small shapes consistent with the module: input_size == output_size (one-hot item id),
    # hidden_size (deliberately not 128-aligned to exercise the padding path), num_layers=1.
    B = 8            # batch_size
    V = 256          # input_size == output_size (n_items)
    H = 100          # hidden_size (GRU4REC-style, non-128-aligned)
    O = V            # output_size

    key = jax.random.PRNGKey(0)
    k = jax.random.split(key, 8)
    s = 1.0 / jnp.sqrt(H)

    params = {
        # torch convention: weight_ih_l0 (3H, V), weight_hh_l0 (3H, H), gate order [r, z, n]
        "w_ih": jax.random.uniform(k[0], (3 * H, V), jnp.float32, -s, s),
        "w_hh": jax.random.uniform(k[1], (3 * H, H), jnp.float32, -s, s),
        "b_ih": jax.random.uniform(k[2], (3 * H,), jnp.float32, -s, s),
        "b_hh": jax.random.uniform(k[3], (3 * H,), jnp.float32, -s, s),
        # h2o: nn.Linear(H, O)
        "w_h2o": jax.random.uniform(k[4], (O, H), jnp.float32, -s, s),
        "b_h2o": jax.random.uniform(k[5], (O,), jnp.float32, -s, s),
    }

    item_idx = jax.random.randint(k[6], (B,), 0, V, dtype=jnp.int32)
    hidden = jax.random.normal(k[7], (1, B, H), jnp.float32)   # init_hidden would be zeros

    logit_ref, h_ref = ref_forward(item_idx, hidden, params)

    # f32 compute path, small tile -> multi-tile grid (structural + tight numerical check).
    prep32 = prepare_gru4rec_params(params, compute_dtype=jnp.float32, block_o=128)
    logit32, h32 = gru4rec_forward(item_idx, hidden, prep32)
    jax.block_until_ready((logit32, h32))
    assert logit32.shape == (B, O) and h32.shape == (1, B, H)
    assert jnp.allclose(logit32, logit_ref, atol=1e-3, rtol=1e-3)
    assert jnp.allclose(h32, h_ref, atol=1e-3, rtol=1e-3)

    # bf16 matmul path with default (large, clamped) output tile: production setting.
    prep_bf = prepare_gru4rec_params(params, compute_dtype=jnp.bfloat16)   # block_o clamped to 256
    logit_bf, h_bf = gru4rec_forward(item_idx, hidden, prep_bf)
    jax.block_until_ready((logit_bf, h_bf))
    assert logit_bf.shape == (B, O) and h_bf.shape == (1, B, H)
    assert jnp.allclose(logit_bf, logit_ref, atol=5e-2, rtol=5e-2)
    assert jnp.allclose(h_bf, h_ref, atol=5e-2, rtol=5e-2)

    print("KERNEL_OK")
</pallas_src>

<mosaic_0001>
module attributes {stable_mosaic.version = 11 : i64} {
  func.func @gru_cell_kernel(%arg0: i32, %arg1: memref<8xi32, #tpu.memory_space<smem>>, %arg2: memref<256x384xf32, #tpu.memory_space<any>>, %arg3: memref<8x128xf32, #tpu.memory_space<vmem>>, %arg4: memref<128x384xf32, #tpu.memory_space<vmem>>, %arg5: memref<1x384xf32, #tpu.memory_space<vmem>>, %arg6: memref<8x128xf32, #tpu.memory_space<vmem>>, %arg7: memref<8x128xf32, #tpu.memory_space<vmem>>, %arg8: memref<8x384xf32, #tpu.memory_space<vmem>>, %arg9: memref<8x!tpu.dma_semaphore, #tpu.memory_space<semaphore_mem>>) attributes {dimension_semantics = [#tpu.dimension_semantics<arbitrary>], iteration_bounds = array<i64: 1>, scalar_prefetch = 1 : i64, scratch_operands = 2 : i64, tpu.core_type = #tpu.core_type<tc>, window_params = [{}, {pipeline_mode = #tpu.pipeline_mode<synchronous>, transform_indices = @transform_1, window_bounds = array<i64: 8, 128>}, {pipeline_mode = #tpu.pipeline_mode<synchronous>, transform_indices = @transform_2, window_bounds = array<i64: 128, 384>}, {pipeline_mode = #tpu.pipeline_mode<synchronous>, transform_indices = @transform_3, window_bounds = array<i64: 1, 384>}, {pipeline_mode = #tpu.pipeline_mode<synchronous>, transform_indices = @transform_4, window_bounds = array<i64: 8, 128>}, {pipeline_mode = #tpu.pipeline_mode<synchronous>, transform_indices = @transform_5, window_bounds = array<i64: 8, 128>}]} {
    %c0 = arith.constant 0 : index
    %0 = memref.load %arg1[%c0] : memref<8xi32, #tpu.memory_space<smem>>
    %c0_i32 = arith.constant 0 : i32
    %c255_i32 = arith.constant 255 : i32
    %1 = arith.maxsi %c0_i32, %0 : i32
    %2 = arith.minsi %c255_i32, %1 : i32
    %c0_i32_0 = arith.constant 0 : i32
    %c0_i32_1 = arith.constant 0 : i32
    %3 = tpu.memref_slice %arg2[%2, %c0_i32_1] : memref<256x384xf32, #tpu.memory_space<any>> -> memref<1x384xf32, #tpu.memory_space<any>>
    %c0_i32_2 = arith.constant 0 : i32
    %c0_i32_3 = arith.constant 0 : i32
    %4 = tpu.memref_slice %arg8[%c0_i32_2, %c0_i32_3] : memref<8x384xf32, #tpu.memory_space<vmem>> -> memref<1x384xf32, #tpu.memory_space<vmem>>
    %5 = tpu.memref_slice %arg9[%c0_i32_0] : memref<8x!tpu.dma_semaphore, #tpu.memory_space<semaphore_mem>> -> memref<1x!tpu.dma_semaphore, #tpu.memory_space<semaphore_mem>>
    %6 = tpu.memref_squeeze %5 : memref<1x!tpu.dma_semaphore, #tpu.memory_space<semaphore_mem>> -> memref<!tpu.dma_semaphore, #tpu.memory_space<semaphore_mem>>
    tpu.enqueue_dma source(%3 : memref<1x384xf32, #tpu.memory_space<any>>) target(%4 : memref<1x384xf32, #tpu.memory_space<vmem>>) target_semaphore(%6 : memref<!tpu.dma_semaphore, #tpu.memory_space<semaphore_mem>>)
    %c1 = arith.constant 1 : index
    %7 = memref.load %arg1[%c1] : memref<8xi32, #tpu.memory_space<smem>>
    %c0_i32_4 = arith.constant 0 : i32
    %c255_i32_5 = arith.constant 255 : i32
    %8 = arith.maxsi %c0_i32_4, %7 : i32
    %9 = arith.minsi %c255_i32_5, %8 : i32
    %c1_i32 = arith.constant 1 : i32
    %c0_i32_6 = arith.constant 0 : i32
    %10 = tpu.memref_slice %arg2[%9, %c0_i32_6] : memref<256x384xf32, #tpu.memory_space<any>> -> memref<1x384xf32, #tpu.memory_space<any>>
    %c1_i32_7 = arith.constant 1 : i32
    %c0_i32_8 = arith.constant 0 : i32
    %11 = tpu.memref_slice %arg8[%c1_i32_7, %c0_i32_8] : memref<8x384xf32, #tpu.memory_space<vmem>> -> memref<1x384xf32, #tpu.memory_space<vmem>>
    %12 = tpu.memref_slice %arg9[%c1_i32] : memref<8x!tpu.dma_semaphore, #tpu.memory_space<semaphore_mem>> -> memref<1x!tpu.dma_semaphore, #tpu.memory_space<semaphore_mem>>
    %13 = tpu.memref_squeeze %12 : memref<1x!tpu.dma_semaphore, #tpu.memory_space<semaphore_mem>> -> memref<!tpu.dma_semaphore, #tpu.memory_space<semaphore_mem>>
    tpu.enqueue_dma source(%10 : memref<1x384xf32, #tpu.memory_space<any>>) target(%11 : memref<1x384xf32, #tpu.memory_space<vmem>>) target_semaphore(%13 : memref<!tpu.dma_semaphore, #tpu.memory_space<semaphore_mem>>)
    %c2 = arith.constant 2 : index
    %14 = memref.load %arg1[%c2] : memref<8xi32, #tpu.memory_space<smem>>
    %c0_i32_9 = arith.constant 0 : i32
    %c255_i32_10 = arith.constant 255 : i32
    %15 = arith.maxsi %c0_i32_9, %14 : i32
    %16 = arith.minsi %c255_i32_10, %15 : i32
    %c2_i32 = arith.constant 2 : i32
    %c0_i32_11 = arith.constant 0 : i32
    %17 = tpu.memref_slice %arg2[%16, %c0_i32_11] : memref<256x384xf32, #tpu.memory_space<any>> -> memref<1x384xf32, #tpu.memory_space<any>>
    %c2_i32_12 = arith.constant 2 : i32
    %c0_i32_13 = arith.constant 0 : i32
    %18 = tpu.memref_slice %arg8[%c2_i32_12, %c0_i32_13] : memref<8x384xf32, #tpu.memory_space<vmem>> -> memref<1x384xf32, #tpu.memory_space<vmem>>
    %19 = tpu.memref_slice %arg9[%c2_i32] : memref<8x!tpu.dma_semaphore, #tpu.memory_space<semaphore_mem>> -> memref<1x!tpu.dma_semaphore, #tpu.memory_space<semaphore_mem>>
    %20 = tpu.memref_squeeze %19 : memref<1x!tpu.dma_semaphore, #tpu.memory_space<semaphore_mem>> -> memref<!tpu.dma_semaphore, #tpu.memory_space<semaphore_mem>>
    tpu.enqueue_dma source(%17 : memref<1x384xf32, #tpu.memory_space<any>>) target(%18 : memref<1x384xf32, #tpu.memory_space<vmem>>) target_semaphore(%20 : memref<!tpu.dma_semaphore, #tpu.memory_space<semaphore_mem>>)
    %c3 = arith.constant 3 : index
    %21 = memref.load %arg1[%c3] : memref<8xi32, #tpu.memory_space<smem>>
    %c0_i32_14 = arith.constant 0 : i32
    %c255_i32_15 = arith.constant 255 : i32
    %22 = arith.maxsi %c0_i32_14, %21 : i32
    %23 = arith.minsi %c255_i32_15, %22 : i32
    %c3_i32 = arith.constant 3 : i32
    %c0_i32_16 = arith.constant 0 : i32
    %24 = tpu.memref_slice %arg2[%23, %c0_i32_16] : memref<256x384xf32, #tpu.memory_space<any>> -> memref<1x384xf32, #tpu.memory_space<any>>
    %c3_i32_17 = arith.constant 3 : i32
    %c0_i32_18 = arith.constant 0 : i32
    %25 = tpu.memref_slice %arg8[%c3_i32_17, %c0_i32_18] : memref<8x384xf32, #tpu.memory_space<vmem>> -> memref<1x384xf32, #tpu.memory_space<vmem>>
    %26 = tpu.memref_slice %arg9[%c3_i32] : memref<8x!tpu.dma_semaphore, #tpu.memory_space<semaphore_mem>> -> memref<1x!tpu.dma_semaphore, #tpu.memory_space<semaphore_mem>>
    %27 = tpu.memref_squeeze %26 : memref<1x!tpu.dma_semaphore, #tpu.memory_space<semaphore_mem>> -> memref<!tpu.dma_semaphore, #tpu.memory_space<semaphore_mem>>
    tpu.enqueue_dma source(%24 : memref<1x384xf32, #tpu.memory_space<any>>) target(%25 : memref<1x384xf32, #tpu.memory_space<vmem>>) target_semaphore(%27 : memref<!tpu.dma_semaphore, #tpu.memory_space<semaphore_mem>>)
    %c4 = arith.constant 4 : index
    %28 = memref.load %arg1[%c4] : memref<8xi32, #tpu.memory_space<smem>>
    %c0_i32_19 = arith.constant 0 : i32
    %c255_i32_20 = arith.constant 255 : i32
    %29 = arith.maxsi %c0_i32_19, %28 : i32
    %30 = arith.minsi %c255_i32_20, %29 : i32
    %c4_i32 = arith.constant 4 : i32
    %c0_i32_21 = arith.constant 0 : i32
    %31 = tpu.memref_slice %arg2[%30, %c0_i32_21] : memref<256x384xf32, #tpu.memory_space<any>> -> memref<1x384xf32, #tpu.memory_space<any>>
    %c4_i32_22 = arith.constant 4 : i32
    %c0_i32_23 = arith.constant 0 : i32
    %32 = tpu.memref_slice %arg8[%c4_i32_22, %c0_i32_23] : memref<8x384xf32, #tpu.memory_space<vmem>> -> memref<1x384xf32, #tpu.memory_space<vmem>>
    %33 = tpu.memref_slice %arg9[%c4_i32] : memref<8x!tpu.dma_semaphore, #tpu.memory_space<semaphore_mem>> -> memref<1x!tpu.dma_semaphore, #tpu.memory_space<semaphore_mem>>
    %34 = tpu.memref_squeeze %33 : memref<1x!tpu.dma_semaphore, #tpu.memory_space<semaphore_mem>> -> memref<!tpu.dma_semaphore, #tpu.memory_space<semaphore_mem>>
    tpu.enqueue_dma source(%31 : memref<1x384xf32, #tpu.memory_space<any>>) target(%32 : memref<1x384xf32, #tpu.memory_space<vmem>>) target_semaphore(%34 : memref<!tpu.dma_semaphore, #tpu.memory_space<semaphore_mem>>)
    %c5 = arith.constant 5 : index
    %35 = memref.load %arg1[%c5] : memref<8xi32, #tpu.memory_space<smem>>
    %c0_i32_24 = arith.constant 0 : i32
    %c255_i32_25 = arith.constant 255 : i32
    %36 = arith.maxsi %c0_i32_24, %35 : i32
    %37 = arith.minsi %c255_i32_25, %36 : i32
    %c5_i32 = arith.constant 5 : i32
    %c0_i32_26 = arith.constant 0 : i32
    %38 = tpu.memref_slice %arg2[%37, %c0_i32_26] : memref<256x384xf32, #tpu.memory_space<any>> -> memref<1x384xf32, #tpu.memory_space<any>>
    %c5_i32_27 = arith.constant 5 : i32
    %c0_i32_28 = arith.constant 0 : i32
    %39 = tpu.memref_slice %arg8[%c5_i32_27, %c0_i32_28] : memref<8x384xf32, #tpu.memory_space<vmem>> -> memref<1x384xf32, #tpu.memory_space<vmem>>
    %40 = tpu.memref_slice %arg9[%c5_i32] : memref<8x!tpu.dma_semaphore, #tpu.memory_space<semaphore_mem>> -> memref<1x!tpu.dma_semaphore, #tpu.memory_space<semaphore_mem>>
    %41 = tpu.memref_squeeze %40 : memref<1x!tpu.dma_semaphore, #tpu.memory_space<semaphore_mem>> -> memref<!tpu.dma_semaphore, #tpu.memory_space<semaphore_mem>>
    tpu.enqueue_dma source(%38 : memref<1x384xf32, #tpu.memory_space<any>>) target(%39 : memref<1x384xf32, #tpu.memory_space<vmem>>) target_semaphore(%41 : memref<!tpu.dma_semaphore, #tpu.memory_space<semaphore_mem>>)
    %c6 = arith.constant 6 : index
    %42 = memref.load %arg1[%c6] : memref<8xi32, #tpu.memory_space<smem>>
    %c0_i32_29 = arith.constant 0 : i32
    %c255_i32_30 = arith.constant 255 : i32
    %43 = arith.maxsi %c0_i32_29, %42 : i32
    %44 = arith.minsi %c255_i32_30, %43 : i32
    %c6_i32 = arith.constant 6 : i32
    %c0_i32_31 = arith.constant 0 : i32
    %45 = tpu.memref_slice %arg2[%44, %c0_i32_31] : memref<256x384xf32, #tpu.memory_space<any>> -> memref<1x384xf32, #tpu.memory_space<any>>
    %c6_i32_32 = arith.constant 6 : i32
    %c0_i32_33 = arith.constant 0 : i32
    %46 = tpu.memref_slice %arg8[%c6_i32_32, %c0_i32_33] : memref<8x384xf32, #tpu.memory_space<vmem>> -> memref<1x384xf32, #tpu.memory_space<vmem>>
    %47 = tpu.memref_slice %arg9[%c6_i32] : memref<8x!tpu.dma_semaphore, #tpu.memory_space<semaphore_mem>> -> memref<1x!tpu.dma_semaphore, #tpu.memory_space<semaphore_mem>>
    %48 = tpu.memref_squeeze %47 : memref<1x!tpu.dma_semaphore, #tpu.memory_space<semaphore_mem>> -> memref<!tpu.dma_semaphore, #tpu.memory_space<semaphore_mem>>
    tpu.enqueue_dma source(%45 : memref<1x384xf32, #tpu.memory_space<any>>) target(%46 : memref<1x384xf32, #tpu.memory_space<vmem>>) target_semaphore(%48 : memref<!tpu.dma_semaphore, #tpu.memory_space<semaphore_mem>>)
    %c7 = arith.constant 7 : index
    %49 = memref.load %arg1[%c7] : memref<8xi32, #tpu.memory_space<smem>>
    %c0_i32_34 = arith.constant 0 : i32
    %c255_i32_35 = arith.constant 255 : i32
    %50 = arith.maxsi %c0_i32_34, %49 : i32
    %51 = arith.minsi %c255_i32_35, %50 : i32
    %c7_i32 = arith.constant 7 : i32
    %c0_i32_36 = arith.constant 0 : i32
    %52 = tpu.memref_slice %arg2[%51, %c0_i32_36] : memref<256x384xf32, #tpu.memory_space<any>> -> memref<1x384xf32, #tpu.memory_space<any>>
    %c7_i32_37 = arith.constant 7 : i32
    %c0_i32_38 = arith.constant 0 : i32
    %53 = tpu.memref_slice %arg8[%c7_i32_37, %c0_i32_38] : memref<8x384xf32, #tpu.memory_space<vmem>> -> memref<1x384xf32, #tpu.memory_space<vmem>>
    %54 = tpu.memref_slice %arg9[%c7_i32] : memref<8x!tpu.dma_semaphore, #tpu.memory_space<semaphore_mem>> -> memref<1x!tpu.dma_semaphore, #tpu.memory_space<semaphore_mem>>
    %55 = tpu.memref_squeeze %54 : memref<1x!tpu.dma_semaphore, #tpu.memory_space<semaphore_mem>> -> memref<!tpu.dma_semaphore, #tpu.memory_space<semaphore_mem>>
    tpu.enqueue_dma source(%52 : memref<1x384xf32, #tpu.memory_space<any>>) target(%53 : memref<1x384xf32, #tpu.memory_space<vmem>>) target_semaphore(%55 : memref<!tpu.dma_semaphore, #tpu.memory_space<semaphore_mem>>)
    %c0_39 = arith.constant 0 : index
    %c0_40 = arith.constant 0 : index
    %56 = vector.load %arg3[%c0_39, %c0_40] : memref<8x128xf32, #tpu.memory_space<vmem>>, vector<8x128xf32>
    %c0_41 = arith.constant 0 : index
    %c0_42 = arith.constant 0 : index
    %57 = vector.load %arg4[%c0_41, %c0_42] : memref<128x384xf32, #tpu.memory_space<vmem>>, vector<128x384xf32>
    %cst = arith.constant dense<0.000000e+00> : vector<8x384xf32>
    %58 = tpu.matmul %56, %57, %cst {dimension_numbers = #tpu.dot_dimension_numbers<[1], [0], [0], [1], [0, 0, 1, 1], [], []>} : vector<8x128xf32>, vector<128x384xf32>, vector<8x384xf32> -> vector<8x384xf32>
    %c0_43 = arith.constant 0 : index
    %c0_44 = arith.constant 0 : index
    %59 = vector.load %arg5[%c0_43, %c0_44] : memref<1x384xf32, #tpu.memory_space<vmem>>, vector<1x384xf32>
    %60 = vector.broadcast %59 : vector<1x384xf32> to vector<8x384xf32>
    %61 = arith.addf %58, %60 : vector<8x384xf32>
    %c0_i32_45 = arith.constant 0 : i32
    %c0_i32_46 = arith.constant 0 : i32
    %62 = tpu.memref_slice %arg2[%2, %c0_i32_46] : memref<256x384xf32, #tpu.memory_space<any>> -> memref<1x384xf32, #tpu.memory_space<any>>
    %c0_i32_47 = arith.constant 0 : i32
    %c0_i32_48 = arith.constant 0 : i32
    %63 = tpu.memref_slice %arg8[%c0_i32_47, %c0_i32_48] : memref<8x384xf32, #tpu.memory_space<vmem>> -> memref<1x384xf32, #tpu.memory_space<vmem>>
    %64 = tpu.memref_slice %arg9[%c0_i32_45] : memref<8x!tpu.dma_semaphore, #tpu.memory_space<semaphore_mem>> -> memref<1x!tpu.dma_semaphore, #tpu.memory_space<semaphore_mem>>
    %65 = tpu.memref_squeeze %64 : memref<1x!tpu.dma_semaphore, #tpu.memory_space<semaphore_mem>> -> memref<!tpu.dma_semaphore, #tpu.memory_space<semaphore_mem>>
    tpu.wait_dma2 semaphore(%65 : memref<!tpu.dma_semaphore, #tpu.memory_space<semaphore_mem>>) src(%62 : memref<1x384xf32, #tpu.memory_space<any>>) dst(%63 : memref<1x384xf32, #tpu.memory_space<vmem>>)
    %c1_i32_49 = arith.constant 1 : i32
    %c0_i32_50 = arith.constant 0 : i32
    %66 = tpu.memref_slice %arg2[%9, %c0_i32_50] : memref<256x384xf32, #tpu.memory_space<any>> -> memref<1x384xf32, #tpu.memory_space<any>>
    %c1_i32_51 = arith.constant 1 : i32
    %c0_i32_52 = arith.constant 0 : i32
    %67 = tpu.memref_slice %arg8[%c1_i32_51, %c0_i32_52] : memref<8x384xf32, #tpu.memory_space<vmem>> -> memref<1x384xf32, #tpu.memory_space<vmem>>
    %68 = tpu.memref_slice %arg9[%c1_i32_49] : memref<8x!tpu.dma_semaphore, #tpu.memory_space<semaphore_mem>> -> memref<1x!tpu.dma_semaphore, #tpu.memory_space<semaphore_mem>>
    %69 = tpu.memref_squeeze %68 : memref<1x!tpu.dma_semaphore, #tpu.memory_space<semaphore_mem>> -> memref<!tpu.dma_semaphore, #tpu.memory_space<semaphore_mem>>
    tpu.wait_dma2 semaphore(%69 : memref<!tpu.dma_semaphore, #tpu.memory_space<semaphore_mem>>) src(%66 : memref<1x384xf32, #tpu.memory_space<any>>) dst(%67 : memref<1x384xf32, #tpu.memory_space<vmem>>)
    %c2_i32_53 = arith.constant 2 : i32
    %c0_i32_54 = arith.constant 0 : i32
    %70 = tpu.memref_slice %arg2[%16, %c0_i32_54] : memref<256x384xf32, #tpu.memory_space<any>> -> memref<1x384xf32, #tpu.memory_space<any>>
    %c2_i32_55 = arith.constant 2 : i32
    %c0_i32_56 = arith.constant 0 : i32
    %71 = tpu.memref_slice %arg8[%c2_i32_55, %c0_i32_56] : memref<8x384xf32, #tpu.memory_space<vmem>> -> memref<1x384xf32, #tpu.memory_space<vmem>>
    %72 = tpu.memref_slice %arg9[%c2_i32_53] : memref<8x!tpu.dma_semaphore, #tpu.memory_space<semaphore_mem>> -> memref<1x!tpu.dma_semaphore, #tpu.memory_space<semaphore_mem>>
    %73 = tpu.memref_squeeze %72 : memref<1x!tpu.dma_semaphore, #tpu.memory_space<semaphore_mem>> -> memref<!tpu.dma_semaphore, #tpu.memory_space<semaphore_mem>>
    tpu.wait_dma2 semaphore(%73 : memref<!tpu.dma_semaphore, #tpu.memory_space<semaphore_mem>>) src(%70 : memref<1x384xf32, #tpu.memory_space<any>>) dst(%71 : memref<1x384xf32, #tpu.memory_space<vmem>>)
    %c3_i32_57 = arith.constant 3 : i32
    %c0_i32_58 = arith.constant 0 : i32
    %74 = tpu.memref_slice %arg2[%23, %c0_i32_58] : memref<256x384xf32, #tpu.memory_space<any>> -> memref<1x384xf32, #tpu.memory_space<any>>
    %c3_i32_59 = arith.constant 3 : i32
    %c0_i32_60 = arith.constant 0 : i32
    %75 = tpu.memref_slice %arg8[%c3_i32_59, %c0_i32_60] : memref<8x384xf32, #tpu.memory_space<vmem>> -> memref<1x384xf32, #tpu.memory_space<vmem>>
    %76 = tpu.memref_slice %arg9[%c3_i32_57] : memref<8x!tpu.dma_semaphore, #tpu.memory_space<semaphore_mem>> -> memref<1x!tpu.dma_semaphore, #tpu.memory_space<semaphore_mem>>
    %77 = tpu.memref_squeeze %76 : memref<1x!tpu.dma_semaphore, #tpu.memory_space<semaphore_mem>> -> memref<!tpu.dma_semaphore, #tpu.memory_space<semaphore_mem>>
    tpu.wait_dma2 semaphore(%77 : memref<!tpu.dma_semaphore, #tpu.memory_space<semaphore_mem>>) src(%74 : memref<1x384xf32, #tpu.memory_space<any>>) dst(%75 : memref<1x384xf32, #tpu.memory_space<vmem>>)
    %c4_i32_61 = arith.constant 4 : i32
    %c0_i32_62 = arith.constant 0 : i32
    %78 = tpu.memref_slice %arg2[%30, %c0_i32_62] : memref<256x384xf32, #tpu.memory_space<any>> -> memref<1x384xf32, #tpu.memory_space<any>>
    %c4_i32_63 = arith.constant 4 : i32
    %c0_i32_64 = arith.constant 0 : i32
    %79 = tpu.memref_slice %arg8[%c4_i32_63, %c0_i32_64] : memref<8x384xf32, #tpu.memory_space<vmem>> -> memref<1x384xf32, #tpu.memory_space<vmem>>
    %80 = tpu.memref_slice %arg9[%c4_i32_61] : memref<8x!tpu.dma_semaphore, #tpu.memory_space<semaphore_mem>> -> memref<1x!tpu.dma_semaphore, #tpu.memory_space<semaphore_mem>>
    %81 = tpu.memref_squeeze %80 : memref<1x!tpu.dma_semaphore, #tpu.memory_space<semaphore_mem>> -> memref<!tpu.dma_semaphore, #tpu.memory_space<semaphore_mem>>
    tpu.wait_dma2 semaphore(%81 : memref<!tpu.dma_semaphore, #tpu.memory_space<semaphore_mem>>) src(%78 : memref<1x384xf32, #tpu.memory_space<any>>) dst(%79 : memref<1x384xf32, #tpu.memory_space<vmem>>)
    %c5_i32_65 = arith.constant 5 : i32
    %c0_i32_66 = arith.constant 0 : i32
    %82 = tpu.memref_slice %arg2[%37, %c0_i32_66] : memref<256x384xf32, #tpu.memory_space<any>> -> memref<1x384xf32, #tpu.memory_space<any>>
    %c5_i32_67 = arith.constant 5 : i32
    %c0_i32_68 = arith.constant 0 : i32
    %83 = tpu.memref_slice %arg8[%c5_i32_67, %c0_i32_68] : memref<8x384xf32, #tpu.memory_space<vmem>> -> memref<1x384xf32, #tpu.memory_space<vmem>>
    %84 = tpu.memref_slice %arg9[%c5_i32_65] : memref<8x!tpu.dma_semaphore, #tpu.memory_space<semaphore_mem>> -> memref<1x!tpu.dma_semaphore, #tpu.memory_space<semaphore_mem>>
    %85 = tpu.memref_squeeze %84 : memref<1x!tpu.dma_semaphore, #tpu.memory_space<semaphore_mem>> -> memref<!tpu.dma_semaphore, #tpu.memory_space<semaphore_mem>>
    tpu.wait_dma2 semaphore(%85 : memref<!tpu.dma_semaphore, #tpu.memory_space<semaphore_mem>>) src(%82 : memref<1x384xf32, #tpu.memory_space<any>>) dst(%83 : memref<1x384xf32, #tpu.memory_space<vmem>>)
    %c6_i32_69 = arith.constant 6 : i32
    %c0_i32_70 = arith.constant 0 : i32
    %86 = tpu.memref_slice %arg2[%44, %c0_i32_70] : memref<256x384xf32, #tpu.memory_space<any>> -> memref<1x384xf32, #tpu.memory_space<any>>
    %c6_i32_71 = arith.constant 6 : i32
    %c0_i32_72 = arith.constant 0 : i32
    %87 = tpu.memref_slice %arg8[%c6_i32_71, %c0_i32_72] : memref<8x384xf32, #tpu.memory_space<vmem>> -> memref<1x384xf32, #tpu.memory_space<vmem>>
    %88 = tpu.memref_slice %arg9[%c6_i32_69] : memref<8x!tpu.dma_semaphore, #tpu.memory_space<semaphore_mem>> -> memref<1x!tpu.dma_semaphore, #tpu.memory_space<semaphore_mem>>
    %89 = tpu.memref_squeeze %88 : memref<1x!tpu.dma_semaphore, #tpu.memory_space<semaphore_mem>> -> memref<!tpu.dma_semaphore, #tpu.memory_space<semaphore_mem>>
    tpu.wait_dma2 semaphore(%89 : memref<!tpu.dma_semaphore, #tpu.memory_space<semaphore_mem>>) src(%86 : memref<1x384xf32, #tpu.memory_space<any>>) dst(%87 : memref<1x384xf32, #tpu.memory_space<vmem>>)
    %c7_i32_73 = arith.constant 7 : i32
    %c0_i32_74 = arith.constant 0 : i32
    %90 = tpu.memref_slice %arg2[%51, %c0_i32_74] : memref<256x384xf32, #tpu.memory_space<any>> -> memref<1x384xf32, #tpu.memory_space<any>>
    %c7_i32_75 = arith.constant 7 : i32
    %c0_i32_76 = arith.constant 0 : i32
    %91 = tpu.memref_slice %arg8[%c7_i32_75, %c0_i32_76] : memref<8x384xf32, #tpu.memory_space<vmem>> -> memref<1x384xf32, #tpu.memory_space<vmem>>
    %92 = tpu.memref_slice %arg9[%c7_i32_73] : memref<8x!tpu.dma_semaphore, #tpu.memory_space<semaphore_mem>> -> memref<1x!tpu.dma_semaphore, #tpu.memory_space<semaphore_mem>>
    %93 = tpu.memref_squeeze %92 : memref<1x!tpu.dma_semaphore, #tpu.memory_space<semaphore_mem>> -> memref<!tpu.dma_semaphore, #tpu.memory_space<semaphore_mem>>
    tpu.wait_dma2 semaphore(%93 : memref<!tpu.dma_semaphore, #tpu.memory_space<semaphore_mem>>) src(%90 : memref<1x384xf32, #tpu.memory_space<any>>) dst(%91 : memref<1x384xf32, #tpu.memory_space<vmem>>)
    %c0_77 = arith.constant 0 : index
    %c0_78 = arith.constant 0 : index
    %94 = vector.load %arg8[%c0_77, %c0_78] : memref<8x384xf32, #tpu.memory_space<vmem>>, vector<8x384xf32>
    %95 = vector.extract_strided_slice %94 {offsets = [0, 0], sizes = [8, 128], strides = [1, 1]} : vector<8x384xf32> to vector<8x128xf32>
    %96 = vector.extract_strided_slice %61 {offsets = [0, 0], sizes = [8, 128], strides = [1, 1]} : vector<8x384xf32> to vector<8x128xf32>
    %97 = arith.addf %95, %96 : vector<8x128xf32>
    %98 = arith.negf %97 : vector<8x128xf32>
    %99 = math.exp %98 : vector<8x128xf32>
    %cst_79 = arith.constant 1.000000e+00 : f32
    %100 = vector.broadcast %cst_79 : f32 to vector<8x128xf32>
    %101 = arith.addf %100, %99 : vector<8x128xf32>
    %102 = arith.divf %100, %101 : vector<8x128xf32>
    %103 = vector.extract_strided_slice %94 {offsets = [0, 128], sizes = [8, 128], strides = [1, 1]} : vector<8x384xf32> to vector<8x128xf32>
    %104 = vector.extract_strided_slice %61 {offsets = [0, 128], sizes = [8, 128], strides = [1, 1]} : vector<8x384xf32> to vector<8x128xf32>
    %105 = arith.addf %103, %104 : vector<8x128xf32>
    %106 = arith.negf %105 : vector<8x128xf32>
    %107 = math.exp %106 : vector<8x128xf32>
    %cst_80 = arith.constant 1.000000e+00 : f32
    %108 = vector.broadcast %cst_80 : f32 to vector<8x128xf32>
    %109 = arith.addf %108, %107 : vector<8x128xf32>
    %110 = arith.divf %108, %109 : vector<8x128xf32>
    %111 = vector.extract_strided_slice %94 {offsets = [0, 256], sizes = [8, 128], strides = [1, 1]} : vector<8x384xf32> to vector<8x128xf32>
    %112 = vector.extract_strided_slice %61 {offsets = [0, 256], sizes = [8, 128], strides = [1, 1]} : vector<8x384xf32> to vector<8x128xf32>
    %113 = arith.mulf %102, %112 : vector<8x128xf32>
    %114 = arith.addf %111, %113 : vector<8x128xf32>
    %115 = math.tanh %114 : vector<8x128xf32>
    %cst_81 = arith.constant 1.000000e+00 : f32
    %116 = vector.broadcast %cst_81 : f32 to vector<8x128xf32>
    %117 = arith.subf %116, %110 : vector<8x128xf32>
    %118 = arith.mulf %117, %115 : vector<8x128xf32>
    %119 = arith.mulf %110, %56 : vector<8x128xf32>
    %120 = arith.addf %118, %119 : vector<8x128xf32>
    %c0_82 = arith.constant 0 : index
    %c0_83 = arith.constant 0 : index
    %121 = vector.load %arg6[%c0_82, %c0_83] : memref<8x128xf32, #tpu.memory_space<vmem>>, vector<8x128xf32>
    tpu.vector_store %arg6[%c0_82, %c0_83], %120 {strides = array<i32>} : memref<8x128xf32, #tpu.memory_space<vmem>>, vector<8x128xf32>,
    %c0_84 = arith.constant 0 : index
    %c0_85 = arith.constant 0 : index
    %122 = vector.load %arg7[%c0_84, %c0_85] : memref<8x128xf32, #tpu.memory_space<vmem>>, vector<8x128xf32>
    tpu.vector_store %arg7[%c0_84, %c0_85], %120 {strides = array<i32>} : memref<8x128xf32, #tpu.memory_space<vmem>>, vector<8x128xf32>,
    return
  }
  func.func @transform_1(%arg0: i32, %arg1: memref<8xi32, #tpu.memory_space<smem>>) -> (i32, i32) {
    %c0_i32 = arith.constant 0 : i32
    %c0_i32_0 = arith.constant 0 : i32
    %c0_i32_1 = arith.constant 0 : i32
    return %c0_i32, %c0_i32_0 : i32, i32
  }
  func.func @transform_2(%arg0: i32, %arg1: memref<8xi32, #tpu.memory_space<smem>>) -> (i32, i32) {
    %c0_i32 = arith.constant 0 : i32
    %c0_i32_0 = arith.constant 0 : i32
    %c0_i32_1 = arith.constant 0 : i32
    return %c0_i32, %c0_i32_0 : i32, i32
  }
  func.func @transform_3(%arg0: i32, %arg1: memref<8xi32, #tpu.memory_space<smem>>) -> (i32, i32) {
    %c0_i32 = arith.constant 0 : i32
    %c0_i32_0 = arith.constant 0 : i32
    %c0_i32_1 = arith.constant 0 : i32
    return %c0_i32, %c0_i32_0 : i32, i32
  }
  func.func @transform_4(%arg0: i32, %arg1: memref<8xi32, #tpu.memory_space<smem>>) -> (i32, i32) {
    %c0_i32 = arith.constant 0 : i32
    %c0_i32_0 = arith.constant 0 : i32
    %c0_i32_1 = arith.constant 0 : i32
    return %c0_i32, %c0_i32_0 : i32, i32
  }
  func.func @transform_5(%arg0: i32, %arg1: memref<8xi32, #tpu.memory_space<smem>>) -> (i32, i32) {
    %c0_i32 = arith.constant 0 : i32
    %c0_i32_0 = arith.constant 0 : i32
    %c0_i32_1 = arith.constant 0 : i32
    return %c0_i32, %c0_i32_0 : i32, i32
  }
}

</mosaic_0001>

<bundles_post_ra>
// kernel: tpu_custom_call.1
= control target key start
LH: loop header
LB: loop body
LE: loop exit
PB: predicated region body
PF: predicated region fallthrough
CT: control target
= control target key end

     0   :  { %s1011_s21 = smov [#allocation5]   ;;  %s1305_s0 = inlined_call_operand.hbm [shape: s32[8], index: 0, kind: input, shape index: {}]   ;;  %s1306_s1 = inlined_call_operand.hbm [shape: f32[256,384], index: 1, kind: input, shape index: {}]   ;;  %s1307_s2 = inlined_call_operand.hbm [shape: f32[8,128], index: 2, kind: input, shape index: {}]   ;;  %s1308_s3 = inlined_call_operand.hbm [shape: f32[128,384], index: 3, kind: input, shape index: {}]   ;;  %s1309_s4 = inlined_call_operand.vmem [shape: f32[1,384], index: 4, kind: input, shape index: {}]   ;;  %s1310_s5 = inlined_call_operand.hbm [shape: f32[8,128], index: 5, kind: output, shape index: {0}]   ;;  %s1311_s6 = inlined_call_operand.hbm [shape: f32[8,128], index: 6, kind: output, shape index: {1}]  }
   0x1   :  { %13 = dma.hbm_to_smem %s1305_s0, 16, %s1011_s21, [#allocation4] }
   0x2   :  { %985 = dma.done.wait [#allocation4], 16 }
   0x3   :  { %986 = vsyncadd [#allocation4], 4294967280 }
   0x4   :  { %15 = sfence }
   0x5   :  { %16 = vsyncpa [#allocation7], 0 }
   0x6   :  { %17 = vsyncpa [#allocation10], 0 }
   0x7   :  { %18 = vsyncpa [#allocation8], 0 }
   0x8   :  { %19 = vsyncpa [#allocation13], 0  ;;  %s1012_s24 = smov [#allocation6]   ;;  %s1013_s26 = smov [#allocation9]  }
   0x9   :  { %s26_s25 = sshll.u32 %s1012_s24, 4  ;;  %s35_s27 = sshll.u32 %s1013_s26, 4  ;;  %s27_s25 = int_to_ptr.vmem [resolvable:$true] %s26_s25  ;;  %s36_s27 = int_to_ptr.vmem [resolvable:$true] %s35_s27 }
   0xa   :  { %s737_s28 = scalar_lea.vmem %s27_s25, 128  ;;  %p742_p1 = scmp.lt.s32.totalorder %s27_s25, %s27_s25 }
   0xb   :  { %p738_p0 = scmp.ne.s32.totalorder %s27_s25, %s737_s28  ;;  %p743_p2 = scmp.lt.s32.totalorder %s737_s28, %s737_s28 }
   0xd   :  { %p744_p3 = por %p743_p2, %p742_p1 }
   0xf   :  { %p745_p4 = pnand %p744_p3, %p738_p0 }
  0x11   :  { %748 = shalt.err (!%p745_p4)
}
  0x12   :  { %29 = dma.hbm_to_vmem [thread:$0]  %s1307_s2, 128, %s27_s25, [#allocation7]  }
  0x13   :  { %s757_s30 = scalar_lea.vmem %s36_s27, 6144  ;;  %p762_p6 = scmp.lt.s32.totalorder %s36_s27, %s36_s27 }
  0x14   :  { %p758_p5 = scmp.ne.s32.totalorder %s36_s27, %s757_s30  ;;  %p763_p7 = scmp.lt.s32.totalorder %s757_s30, %s757_s30 }
  0x16   :  { %p764_p8 = por %p763_p7, %p762_p6 }
  0x18   :  { %p765_p9 = pnand %p764_p8, %p758_p5 }
  0x1a   :  { %768 = shalt.err (!%p765_p9)
}
  0x1b   :  { %s1014_s7 = smov 384   ;;  %s1015_s8 = smov 24  }
  0x1c   :  { %41 = dma.hbm_to_vmem [thread:$0]  %s1308_s3, 6144, %s36_s27, [#allocation10], %s1014_s7, %s1014_s7, %s1015_s8  }
  0x1d   :  { %987 = dma.done.wait [#allocation7], 128  }
  0x1e   :  { %988 = vsyncadd [#allocation7], 4294967168 }
  0x1f   :  { %989 = dma.done.wait [#allocation10], 6144  }
  0x20   :  { %990 = vsyncadd [#allocation10], 4294961152  ;;  %v1016_v0 = vmov 0.0   ;;  %vm1017_vm0 = vmmov 0   ;;  %s1076_s2 = sld [smem:[#allocation5]]  ;;  %s1018_s11 = smov [#allocation2]  }
  0x21   :  { %657 = vmatprep.subr.mxu1 %v1016_v0  ;;  %689 = vmatprep.mubr.msk.f32.mxu1 %vm1017_vm0, %v1016_v0  ;;  %s62_s12 = sshll.u32 %s1018_s11, 4  ;;  %s1079_s13 = sld [smem:[#allocation5 + $0x1]]  ;;  %v239_v1 = vld [vmem:[#allocation9 + $0x170] sm:$0xff]  ;;  %v240_v2 = vld [vmem:[#allocation9 + $0x178] sm:$0xff]  ;;  %v238_v3 = vld [vmem:[#allocation9 + $0x168] sm:$0xff]  ;;  %s1081_s12 = int_to_ptr.vmem [resolvable:$true] %s62_s12 }
  0x22   :  { %322 = vmatprep.mubr.f32.mxu0 %v1016_v0  ;;  %s1019_s3 = smov [#allocation2 + $0x1]   ;;  %s1083_s15 = sld [smem:[#allocation5 + $0x2]]  ;;  %258 = vmatprep.subr.mxu0 %v239_v1  ;;  %v236_v4 = vld [vmem:[#allocation9 + $0x158] sm:$0xff]  ;;  %v237_v5 = vld [vmem:[#allocation9 + $0x160] sm:$0xff]  ;;  %v235_v6 = vld [vmem:[#allocation9 + $0x150] sm:$0xff] }
  0x23   :  { %s80_s14 = sshll.u32 %s1019_s3, 4  ;;  %658 = vmatpush3.msra.mxu1 %v240_v2  ;;  %s1020_s16 = smov [#allocation2 + $0x2]   ;;  %259 = vmatpush1.msra.mxu0 %v238_v3  ;;  %v233_v7 = vld [vmem:[#allocation9 + $0x140] sm:$0xff]  ;;  %v234_v8 = vld [vmem:[#allocation9 + $0x148] sm:$0xff]  ;;  %v232_v9 = vld [vmem:[#allocation9 + $0x138] sm:$0xff]  ;;  %s1087_s14 = int_to_ptr.vmem [resolvable:$true] %s80_s14 }
  0x24   :  { %s1089_s17 = sshll.u32 %s1020_s16, 4  ;;  %659 = vmatprep.subr.mxu1 %v1016_v0  ;;  %260 = vmatprep.subr.mxu0 %v236_v4  ;;  %v230_v10 = vld [vmem:[#allocation9 + $0x128] sm:$0xff]  ;;  %v231_v11 = vld [vmem:[#allocation9 + $0x130] sm:$0xff]  ;;  %v229_v12 = vld [vmem:[#allocation9 + $0x120] sm:$0xff]  ;;  %s1102_s23 = sld [smem:[#allocation5 + $0x3]]  ;;  %s1178_s17 = int_to_ptr.vmem [resolvable:$true] %s1089_s17 }
  0x25   :  { %660 = vmatpush3.msra.mxu1 %v237_v5  ;;  %261 = vmatpush1.msra.mxu0 %v235_v6  ;;  %v227_v13 = vld [vmem:[#allocation9 + $0x110] sm:$0xff]  ;;  %v228_v14 = vld [vmem:[#allocation9 + $0x118] sm:$0xff]  ;;  %v226_v15 = vld [vmem:[#allocation9 + $0x108] sm:$0xff]  ;;  %s1120_s9 = scalar_lea.hbm %s1306_s1, 12288 }
  0x26   :  { %p51_p10 = scmp.gt.s32.totalorder %s1076_s2, 0  ;;  %p559_p11 = scmp.lt.s32.totalorder %s1076_s2, 255  ;;  %661 = vmatprep.subr.mxu1 %v1016_v0  ;;  %262 = vmatprep.subr.mxu0 %v233_v7  ;;  %v224_v16 = vld [vmem:[#allocation9 + $0xf8] sm:$0xff]  ;;  %v225_v17 = vld [vmem:[#allocation9 + $0x100] sm:$0xff]  ;;  %v223_v18 = vld [vmem:[#allocation9 + $0xf0] sm:$0xff] }
  0x27   :  { %p67_p12 = scmp.gt.s32.totalorder %s1079_s13, 0  ;;  %p566_p13 = scmp.lt.s32.totalorder %s1079_s13, 255  ;;  %662 = vmatpush3.msra.mxu1 %v234_v8  ;;  %263 = vmatpush1.msra.mxu0 %v232_v9  ;;  %v221_v19 = vld [vmem:[#allocation9 + $0xe0] sm:$0xff]  ;;  %v222_v20 = vld [vmem:[#allocation9 + $0xe8] sm:$0xff]  ;;  %v220_v21 = vld [vmem:[#allocation9 + $0xd8] sm:$0xff] }
  0x28   :  { %s52_s18 = scalar_select %p51_p10, %s1076_s2, 0  ;;  %663 = vmatprep.subr.mxu1 %v1016_v0  ;;  %264 = vmatprep.subr.mxu0 %v230_v10  ;;  %v218_v22 = vld [vmem:[#allocation9 + $0xc8] sm:$0xff]  ;;  %v219_v23 = vld [vmem:[#allocation9 + $0xd0] sm:$0xff] }
  0x29   :  { %s68_s19 = scalar_select %p67_p12, %s1079_s13, 0  ;;  %664 = vmatpush3.msra.mxu1 %v231_v11  ;;  %265 = vmatpush1.msra.mxu0 %v229_v12 }
  0x2a   :  { %s1313_s18 = smov (!%p559_p11, %s52_s18), 255  ;;  %665 = vmatprep.subr.mxu1 %v1016_v0  ;;  %266 = vmatprep.subr.mxu0 %v227_v13  ;;  %p85_p0 = scmp.gt.s32.totalorder %s1083_s15, 0 }
  0x2b   :  { %s55_s20 = sshrl.u32 %s1313_s18, 3  ;;  %s56_s21 = sand.u32 7, %s1313_s18   ;;  %666 = vmatpush3.msra.mxu1 %v228_v14  ;;  %267 = vmatpush1.msra.mxu0 %v226_v15 }
  0x2c   :  { %s57_s22 = smul.u32 24, %s55_s20  ;;  %s1315_s19 = smov (!%p566_p13, %s68_s19), 255  ;;  %667 = vmatprep.subr.mxu1 %v1016_v0  ;;  %268 = vmatprep.subr.mxu0 %v224_v16 }
  0x2d   :  { %s71_s26 = sshrl.u32 %s1315_s19, 3  ;;  %668 = vmatpush3.msra.mxu1 %v225_v17  ;;  %s72_s29 = sand.u32 7, %s1315_s19   ;;  %269 = vmatpush1.msra.mxu0 %v223_v18 }
  0x2e   :  { %s58_s24 = sadd.s32 %s57_s22, %s56_s21  ;;  %669 = vmatprep.subr.mxu1 %v1016_v0 }
  0x2f   :  { %s564_s25 = sshll.u32 %s58_s24, 4 }
  0x30   :  { %s60_s0 = scalar_lea.hbm %s1306_s1, %s564_s25 }
  0x31   :  { %s769_s30 = scalar_lea.hbm %s60_s0, 48  ;;  %p772_p2 = scmp.lt.s32.totalorder %s60_s0, %s1306_s1 }
  0x32   :  { %p770_p1 = scmp.ne.s32.totalorder %s60_s0, %s769_s30  ;;  %p773_p3 = scmp.lt.s32.totalorder %s1120_s9, %s769_s30 }
  0x34   :  { %p774_p4 = por %p773_p3, %p772_p2 }
  0x36   :  { %p775_p5 = pnand %p774_p4, %p770_p1 }
  0x38   :  { %778 = shalt.err (!%p775_p5)  }
  0x39   :  { %s779_s11 = scalar_lea.vmem %s1081_s12, 48  ;;  %s1129_s13 = scalar_lea.vmem %s1081_s12, 384 }
  0x3a   :  { %p780_p6 = scmp.ne.s32.totalorder %s1081_s12, %s779_s11  ;;  %p784_p7 = scmp.lt.s32.totalorder %s1081_s12, %s1081_s12 }
  0x3b   :  { %p785_p8 = scmp.lt.s32.totalorder %s1129_s13, %s779_s11 }
  0x3d   :  { %p786_p9 = por %p785_p8, %p784_p7 }
  0x3f   :  { %p787_p10 = pnand %p786_p9, %p780_p6 }
  0x41   :  { %790 = shalt.err (!%p787_p10)  }
  0x42   :  { %s1021_s3 = smov 128   ;;  %s1022_s16 = smov 1   ;;  %270 = vmatprep.subr.mxu0 %v221_v19  ;;  %670 = vmatpush3.msra.mxu1 %v222_v20  ;;  %v217_v24 = vld [vmem:[#allocation9 + $0xc0] sm:$0xff]  ;;  %v215_v25 = vld [vmem:[#allocation9 + $0xb0] sm:$0xff]  ;;  %v216_v26 = vld [vmem:[#allocation9 + $0xb8] sm:$0xff] }
  0x43   :  { %65 = dma.hbm_to_vmem [thread:$0]  %s60_s0, 48, %s1081_s12, [#allocation3], %s1021_s3, %s1021_s3, %s1022_s16  ;;  %271 = vmatpush1.msra.mxu0 %v220_v21  ;;  %671 = vmatprep.subr.mxu1 %v1016_v0  ;;  %v214_v27 = vld [vmem:[#allocation9 + $0xa8] sm:$0xff]  ;;  %v212_v28 = vld [vmem:[#allocation9 + $0x98] sm:$0xff]  ;;  %v213_v29 = vld [vmem:[#allocation9 + $0xa0] sm:$0xff] }
  0x44   :  { %s73_s18 = smul.u32 24, %s71_s26  ;;  %272 = vmatprep.subr.mxu0 %v218_v22  ;;  %672 = vmatpush3.msra.mxu1 %v219_v23  ;;  %p573_p11 = scmp.lt.s32.totalorder %s1083_s15, 255  ;;  %v211_v30 = vld [vmem:[#allocation9 + $0x90] sm:$0xff]  ;;  %v209_v31 = vld [vmem:[#allocation9 + $0x80] sm:$0xff]  ;;  %v210_v32 = vld [vmem:[#allocation9 + $0x88] sm:$0xff] }
  0x45   :  { %s1144_s20 = scalar_select %p85_p0, %s1083_s15, 0  ;;  %273 = vmatpush1.msra.mxu0 %v217_v24  ;;  %673 = vmatprep.subr.mxu1 %v1016_v0 }
  0x46   :  { %s74_s21 = sadd.s32 %s73_s18, %s72_s29  ;;  %p103_p12 = scmp.gt.s32.totalorder %s1102_s23, 0  ;;  %274 = vmatprep.subr.mxu0 %v215_v25  ;;  %674 = vmatpush3.msra.mxu1 %v216_v26 }
  0x47   :  { %s571_s22 = sshll.u32 %s74_s21, 4  ;;  %p580_p13 = scmp.lt.s32.totalorder %s1102_s23, 255  ;;  %275 = vmatpush1.msra.mxu0 %v214_v27  ;;  %675 = vmatprep.subr.mxu1 %v1016_v0 }
  0x48   :  { %s76_s26 = scalar_lea.hbm %s1306_s1, %s571_s22 }
  0x49   :  { %s791_s19 = scalar_lea.hbm %s76_s26, 48  ;;  %p794_p1 = scmp.lt.s32.totalorder %s76_s26, %s1306_s1 }
  0x4a   :  { %p792_p0 = scmp.ne.s32.totalorder %s76_s26, %s791_s19  ;;  %p795_p2 = scmp.lt.s32.totalorder %s1120_s9, %s791_s19 }
  0x4c   :  { %p796_p3 = por %p795_p2, %p794_p1 }
  0x4e   :  { %p797_p4 = pnand %p796_p3, %p792_p0 }
  0x50   :  { %800 = shalt.err (!%p797_p4)  }
  0x51   :  { %s801_s0 = scalar_lea.vmem %s1087_s14, 48  ;;  %p806_p6 = scmp.lt.s32.totalorder %s1087_s14, %s1081_s12 }
  0x52   :  { %p802_p5 = scmp.ne.s32.totalorder %s1087_s14, %s801_s0  ;;  %p807_p7 = scmp.lt.s32.totalorder %s1129_s13, %s801_s0 }
  0x54   :  { %p808_p8 = por %p807_p7, %p806_p6 }
  0x56   :  { %p809_p9 = pnand %p808_p8, %p802_p5 }
  0x58   :  { %812 = shalt.err (!%p809_p9)  }
  0x59   :  { %83 = dma.hbm_to_vmem [thread:$0]  %s76_s26, 48, %s1087_s14, [#allocation3 + $0x1], %s1021_s3, %s1021_s3, %s1022_s16  ;;  %276 = vmatprep.subr.mxu0 %v212_v28  ;;  %676 = vmatpush3.msra.mxu1 %v213_v29  ;;  %v208_v33 = vld [vmem:[#allocation9 + $0x78] sm:$0xff]  ;;  %v206_v34 = vld [vmem:[#allocation9 + $0x68] sm:$0xff]  ;;  %v207_v35 = vld [vmem:[#allocation9 + $0x70] sm:$0xff] }
  0x5a   :  { %s1317_s20 = smov (!%p573_p11, %s1144_s20), 255  ;;  %277 = vmatpush1.msra.mxu0 %v211_v30  ;;  %677 = vmatprep.subr.mxu1 %v1016_v0  ;;  %v205_v36 = vld [vmem:[#allocation9 + $0x60] sm:$0xff]  ;;  %v203_v37 = vld [vmem:[#allocation9 + $0x50] sm:$0xff]  ;;  %v204_v38 = vld [vmem:[#allocation9 + $0x58] sm:$0xff]  ;;  %s1023_s8 = smov [#allocation2 + $0x3]  }
  0x5b   :  { %s104_s29 = scalar_select %p103_p12, %s1102_s23, 0  ;;  %278 = vmatprep.subr.mxu0 %v209_v31  ;;  %678 = vmatpush3.msra.mxu1 %v210_v32  ;;  %v202_v39 = vld [vmem:[#allocation9 + $0x48] sm:$0xff]  ;;  %v200_v40 = vld [vmem:[#allocation9 + $0x38] sm:$0xff]  ;;  %v201_v41 = vld [vmem:[#allocation9 + $0x40] sm:$0xff] }
  0x5c   :  { %s89_s30 = sshrl.u32 %s1317_s20, 3  ;;  %s90_s7 = sand.u32 7, %s1317_s20   ;;  %279 = vmatpush1.msra.mxu0 %v208_v33  ;;  %679 = vmatprep.subr.mxu1 %v1016_v0  ;;  %v199_v42 = vld [vmem:[#allocation9 + $0x30] sm:$0xff]  ;;  %v197_v43 = vld [vmem:[#allocation9 + $0x20] sm:$0xff]  ;;  %v198_v44 = vld [vmem:[#allocation9 + $0x28] sm:$0xff] }
  0x5d   :  { %s91_s14 = smul.u32 24, %s89_s30  ;;  %280 = vmatprep.subr.mxu0 %v206_v34  ;;  %680 = vmatpush3.msra.mxu1 %v207_v35  ;;  %s1319_s29 = smov (!%p580_p13, %s104_s29), 255  ;;  %v196_v45 = vld [vmem:[#allocation9 + $0x18] sm:$0xff] }
  0x5e   :  { %281 = vmatpush1.msra.mxu0 %v205_v36  ;;  %681 = vmatprep.subr.mxu1 %v1016_v0  ;;  %s1185_s10 = sshll.u32 %s1023_s8, 4  ;;  %s107_s11 = sshrl.u32 %s1319_s29, 3  ;;  %s117_s10 = int_to_ptr.vmem [resolvable:$true] %s1185_s10 }
  0x5f   :  { %s92_s15 = sadd.s32 %s91_s14, %s90_s7  ;;  %282 = vmatprep.subr.mxu0 %v203_v37  ;;  %682 = vmatpush3.msra.mxu1 %v204_v38  ;;  %s108_s21 = sand.u32 7, %s1319_s29  }
  0x60   :  { %s578_s2 = sshll.u32 %s92_s15, 4  ;;  %283 = vmatpush1.msra.mxu0 %v202_v39  ;;  %683 = vmatprep.subr.mxu1 %v1016_v0 }
  0x61   :  { %s94_s20 = scalar_lea.hbm %s1306_s1, %s578_s2  ;;  %284 = vmatprep.subr.mxu0 %v200_v40  ;;  %684 = vmatpush3.msra.mxu1 %v201_v41 }
  0x62   :  { %s813_s22 = scalar_lea.hbm %s94_s20, 48  ;;  %p816_p11 = scmp.lt.s32.totalorder %s94_s20, %s1306_s1 }
  0x63   :  { %p814_p10 = scmp.ne.s32.totalorder %s94_s20, %s813_s22  ;;  %p817_p12 = scmp.lt.s32.totalorder %s1120_s9, %s813_s22 }
  0x65   :  { %p818_p13 = por %p817_p12, %p816_p11 }
  0x67   :  { %p819_p0 = pnand %p818_p13, %p814_p10 }
  0x69   :  { %822 = shalt.err (!%p819_p0)  }
  0x6a   :  { %s823_s26 = scalar_lea.vmem %s1178_s17, 48  ;;  %p828_p2 = scmp.lt.s32.totalorder %s1178_s17, %s1081_s12 }
  0x6b   :  { %p824_p1 = scmp.ne.s32.totalorder %s1178_s17, %s823_s26  ;;  %p829_p3 = scmp.lt.s32.totalorder %s1129_s13, %s823_s26 }
  0x6d   :  { %p830_p4 = por %p829_p3, %p828_p2 }
  0x6f   :  { %p831_p5 = pnand %p830_p4, %p824_p1 }
  0x71   :  { %834 = shalt.err (!%p831_p5)  }
  0x72   :  { %101 = dma.hbm_to_vmem [thread:$0]  %s94_s20, 48, %s1178_s17, [#allocation3 + $0x2], %s1021_s3, %s1021_s3, %s1022_s16  ;;  %285 = vmatpush1.msra.mxu0 %v199_v42  ;;  %685 = vmatprep.subr.mxu1 %v1016_v0  ;;  %v194_v46 = vld [vmem:[#allocation9 + $0x8] sm:$0xff]  ;;  %v195_v47 = vld [vmem:[#allocation9 + $0x10] sm:$0xff]  ;;  %v193_v48 = vld [vmem:[#allocation9] sm:$0xff] }
  0x73   :  { %s109_s19 = smul.u32 24, %s107_s11  ;;  %286 = vmatprep.subr.mxu0 %v197_v43  ;;  %686 = vmatpush3.msra.mxu1 %v198_v44  ;;  %v1207_v49 = vld [vmem:[#allocation6] sm:$0xff] }
  0x74   :  { %287 = vmatpush1.msra.mxu0 %v196_v45  ;;  %687 = vmatprep.subr.mxu1 %v1016_v0 }
  0x75   :  { %s110_s27 = sadd.s32 %s109_s19, %s108_s21  ;;  %288 = vmatprep.subr.mxu0 %v194_v46  ;;  %688 = vmatpush3.msra.mxu1 %v195_v47 }
  0x76   :  { %s585_s17 = sshll.u32 %s110_s27, 4  ;;  %289 = vmatpush1.msra.mxu0 %v193_v48  ;;  %690 = vmatmul.mubr.f32.vlgmr.msra.gmra.mxu1 %v1207_v49 }
  0x77   :  { %s112_s30 = scalar_lea.hbm %s1306_s1, %s585_s17  ;;  %323 = vmatmul.mubr.f32.vlgmr.msra.gmra.mxu0 %v1207_v49 }
  0x78   :  { %s835_s7 = scalar_lea.hbm %s112_s30, 48  ;;  %p838_p7 = scmp.lt.s32.totalorder %s112_s30, %s1306_s1 }
  0x79   :  { %p836_p6 = scmp.ne.s32.totalorder %s112_s30, %s835_s7  ;;  %p839_p8 = scmp.lt.s32.totalorder %s1120_s9, %s835_s7 }
  0x7b   :  { %p840_p9 = por %p839_p8, %p838_p7 }
  0x7d   :  { %p841_p10 = pnand %p840_p9, %p836_p6 }
  0x7f   :  { %844 = shalt.err (!%p841_p10)  }
  0x80   :  { %s845_s29 = scalar_lea.vmem %s117_s10, 48  ;;  %p850_p12 = scmp.lt.s32.totalorder %s117_s10, %s1081_s12 }
  0x81   :  { %p846_p11 = scmp.ne.s32.totalorder %s117_s10, %s845_s29  ;;  %p851_p13 = scmp.lt.s32.totalorder %s1129_s13, %s845_s29 }
  0x83   :  { %p852_p0 = por %p851_p13, %p850_p12 }
  0x85   :  { %p853_p1 = pnand %p852_p0, %p846_p11 }
  0x87   :  { %856 = shalt.err (!%p853_p1)  }
  0x88   :  { %119 = dma.hbm_to_vmem [thread:$0]  %s112_s30, 48, %s117_s10, [#allocation3 + $0x3], %s1021_s3, %s1021_s3, %s1022_s16 }
  0x89   :  { %s586_s8 = sld [smem:[#allocation5 + $0x4]]  ;;  %s1024_s25 = smov [#allocation2 + $0x4]  }
  0x8a   :  { %s593_s2 = sld [smem:[#allocation5 + $0x5]]  ;;  %s134_s26 = sshll.u32 %s1024_s25, 4  ;;  %s135_s26 = int_to_ptr.vmem [resolvable:$true] %s134_s26 }
  0x8b   :  { %s1227_s11 = sld [smem:[#allocation5 + $0x6]] }
  0x8c   :  { %s1231_s20 = sld [smem:[#allocation5 + $0x7]] }
  0x8f   :  { %p121_p2 = scmp.gt.s32.totalorder %s586_s8, 0  ;;  %p587_p4 = scmp.lt.s32.totalorder %s586_s8, 255 }
  0x90   :  { %p139_p3 = scmp.gt.s32.totalorder %s593_s2, 0  ;;  %p594_p5 = scmp.lt.s32.totalorder %s593_s2, 255 }
  0x91   :  { %s122_s23 = scalar_select %p121_p2, %s586_s8, 0 }
  0x92   :  { %s1321_s2 = smov (!%p139_p3, %s593_s2), 0 }
  0x93   :  { %s1323_s23 = smov (!%p587_p4, %s122_s23), 255  ;;  %s1325_s2 = smov (!%p594_p5, %s1321_s2), 255 }
  0x94   :  { %s125_s18 = sshrl.u32 %s1323_s23, 3  ;;  %s126_s10 = sand.u32 7, %s1323_s23  }
  0x95   :  { %s127_s21 = smul.u32 24, %s125_s18  ;;  %s143_s22 = sshrl.u32 %s1325_s2, 3 }
  0x96   :  { %s144_s0 = sand.u32 7, %s1325_s2  }
  0x97   :  { %s128_s24 = sadd.s32 %s127_s21, %s126_s10 }
  0x98   :  { %s592_s19 = sshll.u32 %s128_s24, 4 }
  0x99   :  { %s130_s28 = scalar_lea.hbm %s1306_s1, %s592_s19 }
  0x9a   :  { %s857_s30 = scalar_lea.hbm %s130_s28, 48  ;;  %p860_p7 = scmp.lt.s32.totalorder %s130_s28, %s1306_s1 }
  0x9b   :  { %p858_p6 = scmp.ne.s32.totalorder %s130_s28, %s857_s30  ;;  %p861_p8 = scmp.lt.s32.totalorder %s1120_s9, %s857_s30 }
  0x9d   :  { %p862_p9 = por %p861_p8, %p860_p7 }
  0x9f   :  { %p863_p10 = pnand %p862_p9, %p858_p6 }
  0xa1   :  { %866 = shalt.err (!%p863_p10)  }
  0xa2   :  { %s867_s15 = scalar_lea.vmem %s135_s26, 48  ;;  %p872_p12 = scmp.lt.s32.totalorder %s135_s26, %s1081_s12 }
  0xa3   :  { %p868_p11 = scmp.ne.s32.totalorder %s135_s26, %s867_s15  ;;  %p873_p13 = scmp.lt.s32.totalorder %s1129_s13, %s867_s15 }
  0xa5   :  { %p874_p0 = por %p873_p13, %p872_p12 }
  0xa7   :  { %p875_p1 = pnand %p874_p0, %p868_p11 }
  0xa9   :  { %878 = shalt.err (!%p875_p1)  }
  0xaa   :  { %137 = dma.hbm_to_vmem [thread:$0]  %s130_s28, 48, %s135_s26, [#allocation3 + $0x4], %s1021_s3, %s1021_s3, %s1022_s16 }
  0xab   :  { %s145_s29 = smul.u32 24, %s143_s22  ;;  %s1025_s8 = smov [#allocation2 + $0x5]  }
  0xac   :  { %s152_s2 = sshll.u32 %s1025_s8, 4  ;;  %p157_p2 = scmp.gt.s32.totalorder %s1227_s11, 0  ;;  %s153_s2 = int_to_ptr.vmem [resolvable:$true] %s152_s2 }
  0xad   :  { %s146_s23 = sadd.s32 %s145_s29, %s144_s0  ;;  %p601_p3 = scmp.lt.s32.totalorder %s1227_s11, 255 }
  0xae   :  { %s599_s18 = sshll.u32 %s146_s23, 4 }
  0xaf   :  { %s148_s24 = scalar_lea.hbm %s1306_s1, %s599_s18 }
  0xb0   :  { %s879_s25 = scalar_lea.hbm %s148_s24, 48  ;;  %p882_p5 = scmp.lt.s32.totalorder %s148_s24, %s1306_s1 }
  0xb1   :  { %p880_p4 = scmp.ne.s32.totalorder %s148_s24, %s879_s25  ;;  %p883_p6 = scmp.lt.s32.totalorder %s1120_s9, %s879_s25 }
  0xb3   :  { %p884_p7 = por %p883_p6, %p882_p5 }
  0xb5   :  { %p885_p8 = pnand %p884_p7, %p880_p4 }
  0xb7   :  { %888 = shalt.err (!%p885_p8)  }
  0xb8   :  { %s889_s22 = scalar_lea.vmem %s153_s2, 48  ;;  %p894_p10 = scmp.lt.s32.totalorder %s153_s2, %s1081_s12 }
  0xb9   :  { %p890_p9 = scmp.ne.s32.totalorder %s153_s2, %s889_s22  ;;  %p895_p11 = scmp.lt.s32.totalorder %s1129_s13, %s889_s22 }
  0xbb   :  { %p896_p12 = por %p895_p11, %p894_p10 }
  0xbd   :  { %p897_p13 = pnand %p896_p12, %p890_p9 }
  0xbf   :  { %900 = shalt.err (!%p897_p13)  }
  0xc0   :  { %155 = dma.hbm_to_vmem [thread:$0]  %s148_s24, 48, %s153_s2, [#allocation3 + $0x5], %s1021_s3, %s1021_s3, %s1022_s16 }
  0xc1   :  { %s158_s26 = scalar_select %p157_p2, %s1227_s11, 0 }
  0xc2   :  { %s1026_s17 = smov [#allocation2 + $0x6]   ;;  %p175_p0 = scmp.gt.s32.totalorder %s1231_s20, 0 }
  0xc3   :  { %s170_s28 = sshll.u32 %s1026_s17, 4  ;;  %s1327_s26 = smov (!%p601_p3, %s158_s26), 255  ;;  %s171_s28 = int_to_ptr.vmem [resolvable:$true] %s170_s28 }
  0xc4   :  { %s161_s0 = sshrl.u32 %s1327_s26, 3  ;;  %s162_s30 = sand.u32 7, %s1327_s26  }
  0xc5   :  { %s163_s7 = smul.u32 24, %s161_s0  ;;  %p608_p1 = scmp.lt.s32.totalorder %s1231_s20, 255 }
  0xc6   :  { %s176_s14 = scalar_select %p175_p0, %s1231_s20, 0 }
  0xc7   :  { %s164_s15 = sadd.s32 %s163_s7, %s162_s30 }
  0xc8   :  { %s606_s29 = sshll.u32 %s164_s15, 4 }
  0xc9   :  { %s166_s2 = scalar_lea.hbm %s1306_s1, %s606_s29 }
  0xca   :  { %s901_s18 = scalar_lea.hbm %s166_s2, 48  ;;  %p904_p4 = scmp.lt.s32.totalorder %s166_s2, %s1306_s1 }
  0xcb   :  { %p902_p2 = scmp.ne.s32.totalorder %s166_s2, %s901_s18  ;;  %p905_p5 = scmp.lt.s32.totalorder %s1120_s9, %s901_s18 }
  0xcd   :  { %p906_p3 = por %p905_p5, %p904_p4 }
  0xcf   :  { %p907_p6 = pnand %p906_p3, %p902_p2 }
  0xd1   :  { %910 = shalt.err (!%p907_p6)  }
  0xd2   :  { %s911_s11 = scalar_lea.vmem %s171_s28, 48  ;;  %p916_p8 = scmp.lt.s32.totalorder %s171_s28, %s1081_s12 }
  0xd3   :  { %p912_p7 = scmp.ne.s32.totalorder %s171_s28, %s911_s11  ;;  %p917_p9 = scmp.lt.s32.totalorder %s1129_s13, %s911_s11 }
  0xd5   :  { %p918_p10 = por %p917_p9, %p916_p8 }
  0xd7   :  { %p919_p11 = pnand %p918_p10, %p912_p7 }
  0xd9   :  { %922 = shalt.err (!%p919_p11)  }
  0xda   :  { %173 = dma.hbm_to_vmem [thread:$0]  %s166_s2, 48, %s171_s28, [#allocation3 + $0x6], %s1021_s3, %s1021_s3, %s1022_s16 }
  0xdb   :  { %s1329_s14 = smov (!%p608_p1, %s176_s14), 255  ;;  %s1027_s24 = smov [#allocation2 + $0x7]  }
  0xdc   :  { %s188_s25 = sshll.u32 %s1027_s24, 4  ;;  %s179_s19 = sshrl.u32 %s1329_s14, 3  ;;  %s189_s25 = int_to_ptr.vmem [resolvable:$true] %s188_s25 }
  0xdd   :  { %s180_s27 = sand.u32 7, %s1329_s14   ;;  %s181_s22 = smul.u32 24, %s179_s19 }
  0xdf   :  { %s182_s26 = sadd.s32 %s181_s22, %s180_s27 }
  0xe0   :  { %s613_s17 = sshll.u32 %s182_s26, 4 }
  0xe1   :  { %s184_s7 = scalar_lea.hbm %s1306_s1, %s613_s17 }
  0xe2   :  { %s923_s15 = scalar_lea.hbm %s184_s7, 48  ;;  %p926_p13 = scmp.lt.s32.totalorder %s184_s7, %s1306_s1 }
  0xe3   :  { %p924_p12 = scmp.ne.s32.totalorder %s184_s7, %s923_s15  ;;  %p927_p0 = scmp.lt.s32.totalorder %s1120_s9, %s923_s15 }
  0xe5   :  { %p928_p1 = por %p927_p0, %p926_p13 }
  0xe7   :  { %p929_p2 = pnand %p928_p1, %p924_p12 }
  0xe9   :  { %932 = shalt.err (!%p929_p2)  }
  0xea   :  { %s933_s20 = scalar_lea.vmem %s189_s25, 48  ;;  %p938_p5 = scmp.lt.s32.totalorder %s189_s25, %s1081_s12 }
  0xeb   :  { %p934_p4 = scmp.ne.s32.totalorder %s189_s25, %s933_s20  ;;  %p939_p3 = scmp.lt.s32.totalorder %s1129_s13, %s933_s20 }
  0xed   :  { %p940_p6 = por %p939_p3, %p938_p5 }
  0xef   :  { %p941_p7 = pnand %p940_p6, %p934_p4 }
  0xf1   :  { %944 = shalt.err (!%p941_p7)  }
  0xf2   :  { %191 = dma.hbm_to_vmem [thread:$0]  %s184_s7, 48, %s189_s25, [#allocation3 + $0x7], %s1021_s3, %s1021_s3, %s1022_s16  ;;  %v243_v50 = vlaneseq }
  0xf3   :  { %v241_v53 = vld [vmem:[%s1309_s4] sm:$0x7] }
  0xf4   :  { %v244_v51 = vshrl.u32 %v243_v50, 7 }
  0xf6   :  { %v253_v52 = vsub.s32 2, %v244_v51  ;;  %v245_v54 = vsub.s32 0, %v244_v51  ;;  %v249_v55 = vsub.s32 1, %v244_v51 }
  0xf8   :  { %v254_v56 = vrot.slane %v241_v53, %v253_v52  ;;  %v246_v57 = vrot.slane %v241_v53, %v245_v54  ;;  %v250_v59 = vrot.slane %v241_v53, %v249_v55 }
 0x136   :  { %v395_v58 = vpop.f32.mrf.mxu1 }
 0x137   :  { %v396_v60 = vadd.f32 %v395_v58, %v254_v56  ;;  %v324_v61 = vpop.f32.mrf.mxu0 }
 0x138   :  { %v325_v62 = vadd.f32 %v324_v61, %v246_v57  ;;  %v691_v63 = vpop.f32.mrf.mxu1 }
 0x139   :  { %v326_v0 = vpop.f32.mrf.mxu0 }
 0x13a   :  { %v327_v1 = vadd.f32 %v326_v0, %v250_v59 }
 0x13b   :  { %991 = dma.done.wait [#allocation3], 48 }
 0x13c   :  { %992 = vsyncadd [#allocation3], 4294967248 }
 0x13d   :  { %993 = dma.done.wait [#allocation3 + $0x1], 48 }
 0x13e   :  { %994 = vsyncadd [#allocation3 + $0x1], 4294967248 }
 0x13f   :  { %995 = dma.done.wait [#allocation3 + $0x2], 48 }
 0x140   :  { %996 = vsyncadd [#allocation3 + $0x2], 4294967248 }
 0x141   :  { %997 = dma.done.wait [#allocation3 + $0x3], 48 }
 0x142   :  { %998 = vsyncadd [#allocation3 + $0x3], 4294967248 }
 0x143   :  { %999 = dma.done.wait [#allocation3 + $0x4], 48 }
 0x144   :  { %1000 = vsyncadd [#allocation3 + $0x4], 4294967248 }
 0x145   :  { %1001 = dma.done.wait [#allocation3 + $0x5], 48 }
 0x146   :  { %1002 = vsyncadd [#allocation3 + $0x5], 4294967248 }
 0x147   :  { %1003 = dma.done.wait [#allocation3 + $0x6], 48 }
 0x148   :  { %1004 = vsyncadd [#allocation3 + $0x6], 4294967248 }
 0x149   :  { %1005 = dma.done.wait [#allocation3 + $0x7], 48 }
 0x14a   :  { %1006 = vsyncadd [#allocation3 + $0x7], 4294967248  ;;  %v416_v2 = vld [vmem:[#allocation2] sm:$0xff]  ;;  %v417_v4 = vld [vmem:[#allocation2 + $0x8] sm:$0xff]  ;;  %s1028_s4 = smov [#allocation11]   ;;  %s1029_s13 = smov [#allocation12]  }
 0x14b   :  { %v419_v3 = vadd.f32 %v416_v2, %v325_v62  ;;  %v426_v6 = vadd.f32 %v417_v4, %v327_v1  ;;  %v418_v13 = vld [vmem:[#allocation2 + $0x10] sm:$0xff]  ;;  %s448_s12 = sshll.u32 %s1028_s4, 4  ;;  %s458_s3 = sshll.u32 %s1029_s13, 4  ;;  %s449_s12 = int_to_ptr.vmem [resolvable:$true] %s448_s12  ;;  %s459_s3 = int_to_ptr.vmem [resolvable:$true] %s458_s3 }
 0x14c   :  { %s945_s16 = scalar_lea.vmem %s449_s12, 128  ;;  %p950_p9 = scmp.lt.s32.totalorder %s449_s12, %s449_s12 }
 0x14d   :  { %v614_v5 = vmul.f32 -1.442695, %v419_v3  ;;  %v615_v7 = vmul.f32 -1.442695, %v426_v6  ;;  %p946_p8 = scmp.ne.s32.totalorder %s449_s12, %s945_s16  ;;  %p951_p10 = scmp.lt.s32.totalorder %s945_s16, %s945_s16 }
 0x14f   :  { %711 = vpow2.f32 %v614_v5  ;;  %p952_p11 = por %p951_p10, %p950_p9 }
 0x150   :  { %713 = vpow2.f32 %v615_v7 }
 0x151   :  { %p953_p12 = pnand %p952_p11, %p946_p8 }
 0x15c   :  { %v712_v8 = vpop.eup %711 }
 0x15d   :  { %v423_v9 = vadd.f32 1.0, %v712_v8  ;;  %v714_v10 = vpop.eup %713 }
 0x15e   :  { %v430_v11 = vadd.f32 1.0, %v714_v10 }
 0x15f   :  { %715 = vrcp.f32 %v423_v9 }
 0x160   :  { %717 = vrcp.f32 %v430_v11 }
 0x16c   :  { %v716_v12 = vpop.eup %715 }
 0x16d   :  { %v433_v14 = vmul.f32 %v716_v12, %v396_v60  ;;  %v718_v16 = vpop.eup %717 }
 0x16e   :  { %v436_v17 = vsub.f32 1.0, %v718_v16  ;;  %v438_v18 = vmul.f32 %v718_v16, %v1207_v49 }
 0x16f   :  { %v434_v15 = vadd.f32 %v433_v14, %v418_v13 }
 0x171   :  { %719 = vtanh.f32 %v434_v15 }
 0x17e   :  { %v720_v19 = vpop.eup %719 }
 0x17f   :  { %v437_v20 = vmul.f32 %v720_v19, %v436_v17 }
 0x181   :  { %v439_v21 = vadd.f32 %v438_v18, %v437_v20 }
 0x183   :  { %440 = vst [vmem:[#allocation11] sm:$0xff] %v439_v21  ;;  %441 = vst [vmem:[#allocation12] sm:$0xff] %v439_v21 }
 0x184   :  { %956 = shalt.err (!%p953_p12)
}
 0x185   :  { %451 = dma.vmem_to_hbm [thread:$0]  %s449_s12, 128, %s1310_s5, [#allocation8]  }
 0x186   :  { %s965_s23 = scalar_lea.vmem %s459_s3, 128  ;;  %p970_p0 = scmp.lt.s32.totalorder %s459_s3, %s459_s3 }
 0x187   :  { %p966_p13 = scmp.ne.s32.totalorder %s459_s3, %s965_s23  ;;  %p971_p1 = scmp.lt.s32.totalorder %s965_s23, %s965_s23 }
 0x189   :  { %p972_p2 = por %p971_p1, %p970_p0 }
 0x18b   :  { %p973_p4 = pnand %p972_p2, %p966_p13 }
 0x18d   :  { %976 = shalt.err (!%p973_p4)
}
 0x18e   :  { %461 = dma.vmem_to_hbm [thread:$0]  %s459_s3, 128, %s1311_s6, [#allocation13]  }
 0x18f   :  { %1007 = dma.done.wait [#allocation8], 128  }
 0x190   :  { %1008 = vsyncadd [#allocation8], 4294967168 }
 0x191   :  { %1009 = dma.done.wait [#allocation13], 128  }
 0x192   :  { %1010 = vsyncadd [#allocation13], 4294967168 }
 0x193   :  { %468 = vsyncpa [#allocation7], 1 }
 0x194   :  { %469 = vsyncpa [#allocation10], 1 }
 0x195   :  { %470 = vsyncpa [#allocation8], 1 }
 0x196   :  { %471 = vsyncpa [#allocation13], 1 }
 0x197   :  { %472 = vsyncmov [#allocation3] }
 0x19a   :  { %s473_s5 = vpop.sfrf %472 }
 0x19b   :  { %p616_p5 = scmp.ne.s32.totalorder %s473_s5, 0 }
 0x19d   :  { %477 = shalt.err (%p616_p5)  }
 0x19e   :  { %479 = vsyncmov [#allocation3 + $0x1] }
 0x1a1   :  { %s480_s10 = vpop.sfrf %479 }
 0x1a2   :  { %p617_p3 = scmp.ne.s32.totalorder %s480_s10, 0 }
 0x1a4   :  { %484 = shalt.err (%p617_p3)  }
 0x1a5   :  { %486 = vsyncmov [#allocation3 + $0x2] }
 0x1a8   :  { %s487_s21 = vpop.sfrf %486 }
 0x1a9   :  { %p618_p6 = scmp.ne.s32.totalorder %s487_s21, 0 }
 0x1ab   :  { %491 = shalt.err (%p618_p6)  }
 0x1ac   :  { %493 = vsyncmov [#allocation3 + $0x3] }
 0x1af   :  { %s494_s6 = vpop.sfrf %493 }
 0x1b0   :  { %p619_p7 = scmp.ne.s32.totalorder %s494_s6, 0 }
 0x1b2   :  { %498 = shalt.err (%p619_p7)  }
 0x1b3   :  { %500 = vsyncmov [#allocation3 + $0x4] }
 0x1b6   :  { %s501_s11 = vpop.sfrf %500 }
 0x1b7   :  { %p620_p8 = scmp.ne.s32.totalorder %s501_s11, 0 }
 0x1b9   :  { %505 = shalt.err (%p620_p8)  }
 0x1ba   :  { %507 = vsyncmov [#allocation3 + $0x5] }
 0x1bd   :  { %s508_s24 = vpop.sfrf %507 }
 0x1be   :  { %p621_p9 = scmp.ne.s32.totalorder %s508_s24, 0 }
 0x1c0   :  { %512 = shalt.err (%p621_p9)  }
 0x1c1   :  { %514 = vsyncmov [#allocation3 + $0x6] }
 0x1c4   :  { %s515_s25 = vpop.sfrf %514 }
 0x1c5   :  { %p622_p10 = scmp.ne.s32.totalorder %s515_s25, 0 }
 0x1c7   :  { %519 = shalt.err (%p622_p10)  }
 0x1c8   :  { %521 = vsyncmov [#allocation3 + $0x7] }
 0x1cb   :  { %s522_s19 = vpop.sfrf %521 }
 0x1cc   :  { %p623_p11 = scmp.ne.s32.totalorder %s522_s19, 0 }
 0x1ce   :  { %526 = shalt.err (%p623_p11)  }

</bundles_post_ra>
